<compile_context>
chip_gen: v7x
topology: tpu7x:2x2x1
jax: 0.10.0
libtpu: 0.0.40
codegen_flags: <defaults>
</compile_context>

<pallas_src>
import functools

import numpy as np
import jax
import jax.numpy as jnp
from jax import lax
from jax.experimental import pallas as pl
from jax.experimental.pallas import tpu as pltpu


def _round_up(x, m):
    return ((x + m - 1) // m) * m


# Safe on all generations: > v5e's 16 MiB default scoped limit, well under
# v7x's 64 MiB physical VMEM; actual usage with these tiles is < 16 MiB.
_COMPILER_PARAMS = pltpu.CompilerParams(
    dimension_semantics=("parallel",),
    vmem_limit_bytes=32 * 1024 * 1024,
)

_TILE_M = 512  # rows per grid step (multiple of 16 for bf16 sublane packing)


# ---------------------------------------------------------------------------
# Pallas kernel 1: fused matmul + bias (+ ReLU), M-tiled grid.
#   x:(M,K) bf16   w:(K,N) bf16   b:(N,) f32   ->  (M,N) out_dtype
# ---------------------------------------------------------------------------
def _matmul_bias_kernel(x_ref, w_ref, b_ref, o_ref, *, relu):
    acc = jnp.dot(x_ref[...], w_ref[...], preferred_element_type=jnp.float32)
    acc = acc + b_ref[...]                      # (1, N) broadcast over rows
    if relu:
        acc = jnp.maximum(acc, 0.0)
    o_ref[...] = acc.astype(o_ref.dtype)


def matmul_bias(x, w, b, *, relu, out_dtype=jnp.float32, tile_m=_TILE_M):
    M, K = x.shape
    Kw, N = w.shape
    assert K == Kw, (K, Kw)
    tm = min(tile_m, _round_up(M, 16))
    Mp = _round_up(M, tm)
    if Mp != M:
        x = jnp.pad(x, ((0, Mp - M), (0, 0)))
    out = pl.pallas_call(
        functools.partial(_matmul_bias_kernel, relu=relu),
        out_shape=jax.ShapeDtypeStruct((Mp, N), out_dtype),
        grid_spec=pltpu.PrefetchScalarGridSpec(
            num_scalar_prefetch=0,
            grid=(Mp // tm,),
            in_specs=[
                pl.BlockSpec((tm, K), lambda i: (i, 0)),   # streamed rows
                pl.BlockSpec((K, N), lambda i: (0, 0)),    # resident weight
                pl.BlockSpec((1, N), lambda i: (0, 0)),    # resident bias
            ],
            out_specs=pl.BlockSpec((tm, N), lambda i: (i, 0)),
        ),
        compiler_params=_COMPILER_PARAMS,
    )(x, w, b.reshape(1, N).astype(jnp.float32))
    return out[:M] if Mp != M else out


# ---------------------------------------------------------------------------
# Pallas kernel 2: fused Flatten-head  fc1(+ReLU) -> fc2, M-tiled grid.
#   x:(M,K) bf16  w1:(K,512) bf16  w2:(512,Ap) bf16  ->  (M,Ap) f32
# ---------------------------------------------------------------------------
def _mlp_head_kernel(x_ref, w1_ref, b1_ref, w2_ref, b2_ref, o_ref):
    h = jnp.dot(x_ref[...], w1_ref[...], preferred_element_type=jnp.float32)
    h = jnp.maximum(h + b1_ref[...], 0.0)
    q = jnp.dot(h.astype(w2_ref.dtype), w2_ref[...],
                preferred_element_type=jnp.float32)
    o_ref[...] = (q + b2_ref[...]).astype(o_ref.dtype)


def mlp_head(x, w1, b1, w2, b2, *, tile_m=_TILE_M):
    M, K = x.shape
    K1, H = w1.shape
    H2, A = w2.shape
    assert K == K1 and H == H2, (K, K1, H, H2)
    tm = min(tile_m, _round_up(M, 16))
    Mp = _round_up(M, tm)
    if Mp != M:
        x = jnp.pad(x, ((0, Mp - M), (0, 0)))
    out = pl.pallas_call(
        _mlp_head_kernel,
        out_shape=jax.ShapeDtypeStruct((Mp, A), jnp.float32),
        grid_spec=pltpu.PrefetchScalarGridSpec(
            num_scalar_prefetch=0,
            grid=(Mp // tm,),
            in_specs=[
                pl.BlockSpec((tm, K), lambda i: (i, 0)),
                pl.BlockSpec((K, H), lambda i: (0, 0)),
                pl.BlockSpec((1, H), lambda i: (0, 0)),
                pl.BlockSpec((H, A), lambda i: (0, 0)),
                pl.BlockSpec((1, A), lambda i: (0, 0)),
            ],
            out_specs=pl.BlockSpec((tm, A), lambda i: (i, 0)),
        ),
        compiler_params=_COMPILER_PARAMS,
    )(x, w1, b1.reshape(1, H).astype(jnp.float32),
      w2, b2.reshape(1, A).astype(jnp.float32))
    return out[:M] if Mp != M else out


# ---------------------------------------------------------------------------
# Conv2d (valid padding, PyTorch semantics) = NHWC im2col (glue) + kernel 1.
# ---------------------------------------------------------------------------
def _im2col_nhwc(x, k, s):
    # x: (N, H, W, C) -> patches: (N*OH*OW, k*k*C), row index (ki*k + kj)*C + c
    N, H, W, C = x.shape
    OH = (H - k) // s + 1
    OW = (W - k) // s + 1
    cols = []
    for ki in range(k):
        for kj in range(k):
            cols.append(lax.slice(
                x, (0, ki, kj, 0),
                (N, ki + s * (OH - 1) + 1, kj + s * (OW - 1) + 1, C),
                (1, s, s, 1)))                               # (N, OH, OW, C)
    patches = jnp.stack(cols, axis=3)                        # (N, OH, OW, k*k, C)
    return patches.reshape(N * OH * OW, k * k * C), OH, OW


def conv2d_relu_nhwc(x, w2, b, *, k, stride, oc):
    """PyTorch nn.Conv2d(k, stride, padding=0) + ReLU.  x NHWC bf16, w2 (k*k*C, OC) bf16."""
    N = x.shape[0]
    patches, OH, OW = _im2col_nhwc(x, k, stride)
    y = matmul_bias(patches, w2, b, relu=True, out_dtype=jnp.bfloat16)
    return y.reshape(N, OH, OW, oc)                          # stays NHWC


# ---------------------------------------------------------------------------
# Parameters: deterministic init (PyTorch-style uniform bounds) + prep step.
# ---------------------------------------------------------------------------
def conv_out_hw(h, w):
    h1, w1 = (h - 8) // 4 + 1, (w - 8) // 4 + 1
    h2, w2 = (h1 - 4) // 2 + 1, (w1 - 4) // 2 + 1
    h3, w3 = (h2 - 3) // 1 + 1, (w2 - 3) // 1 + 1
    return h3, w3


def init_dqn_params(key, c, h, w, num_actions):
    h3, w3 = conv_out_hw(h, w)
    flat_dim = 64 * h3 * w3

    def uni(key, shape, fan_in):
        bound = 1.0 / float(np.sqrt(fan_in))
        return jax.random.uniform(key, shape, jnp.float32, -bound, bound)

    keys = jax.random.split(key, 10)
    return {
        # conv weights OIHW, linear weights (out, in) — same as PyTorch
        "w1": uni(keys[0], (32, c, 8, 8), c * 8 * 8),
        "b1": uni(keys[1], (32,), c * 8 * 8),
        "w2": uni(keys[2], (64, 32, 4, 4), 32 * 4 * 4),
        "b2": uni(keys[3], (64,), 32 * 4 * 4),
        "w3": uni(keys[4], (64, 64, 3, 3), 64 * 3 * 3),
        "b3": uni(keys[5], (64,), 64 * 3 * 3),
        "wl1": uni(keys[6], (512, flat_dim), flat_dim),
        "bl1": uni(keys[7], (512,), flat_dim),
        "wl2": uni(keys[8], (num_actions, 512), 512),
        "bl2": uni(keys[9], (num_actions,), 512),
    }


def prepare_params(params, h, w):
    """One-time weight reordering / transposition / bf16 cast (no per-call cost)."""
    h3, w3 = conv_out_hw(h, w)

    def conv_w(wt):
        oc, c, k, _ = wt.shape
        # OIHW -> (k, k, C, OC) -> (k*k*C, OC): matches NHWC im2col row layout
        return jnp.transpose(wt, (2, 3, 1, 0)).reshape(k * k * c, oc).astype(jnp.bfloat16)

    # fc1 columns: CHW-flatten order -> HWC-flatten order, then (K, 512)
    wl1 = params["wl1"].reshape(512, 64, h3, w3).transpose(0, 2, 3, 1)
    wl1 = wl1.reshape(512, h3 * w3 * 64)

    # fc2: pad action dim to 128 lanes for a lane-dense Q-head store
    A = params["wl2"].shape[0]
    Ap = 128
    wl2p = jnp.zeros((Ap, 512), jnp.float32).at[:A, :].set(params["wl2"])
    bl2p = jnp.zeros((Ap,), jnp.float32).at[:A].set(params["bl2"])

    return {
        "w1": conv_w(params["w1"]), "b1": params["b1"].astype(jnp.float32),
        "w2": conv_w(params["w2"]), "b2": params["b2"].astype(jnp.float32),
        "w3": conv_w(params["w3"]), "b3": params["b3"].astype(jnp.float32),
        "wl1": wl1.T.astype(jnp.bfloat16),      # (flat_dim, 512), HWC ordering
        "bl1": params["bl1"].astype(jnp.float32),
        "wl2": wl2p.T.astype(jnp.bfloat16),     # (512, 128)
        "bl2": bl2p,                            # (128,)
    }


# ---------------------------------------------------------------------------
# Forward pass:  s -> Q(s, *)
# ---------------------------------------------------------------------------
@functools.partial(jax.jit, static_argnums=(2,))
def dqn_forward(prepped, obs, num_actions):
    # single NCHW -> NHWC transpose of the raw observation, then bf16 for MXU
    x = jnp.transpose(obs.astype(jnp.float32), (0, 2, 3, 1)).astype(jnp.bfloat16)
    x = conv2d_relu_nhwc(x, prepped["w1"], prepped["b1"], k=8, stride=4, oc=32)
    x = conv2d_relu_nhwc(x, prepped["w2"], prepped["b2"], k=4, stride=2, oc=64)
    x = conv2d_relu_nhwc(x, prepped["w3"], prepped["b3"], k=3, stride=1, oc=64)
    n = x.shape[0]
    x = x.reshape(n, -1)                         # NHWC flatten (wl1 columns permuted to match)
    q = mlp_head(x, prepped["wl1"], prepped["bl1"], prepped["wl2"], prepped["bl2"])
    return q[:, :num_actions]                    # (N, num_actions)


# ---------------------------------------------------------------------------
# Pure-JAX f32 reference (correctness check, mirrors the PyTorch module).
# ---------------------------------------------------------------------------
def dqn_reference(params, obs):
    x = obs.astype(jnp.float32)
    dn = ("NCHW", "OIHW", "NCHW")
    for wn, bn, s in (("w1", "b1", 4), ("w2", "b2", 2), ("w3", "b3", 1)):
        x = lax.conv_general_dilated(x, params[wn], (s, s), "VALID",
                                     dimension_numbers=dn)
        x = jax.nn.relu(x + params[bn][None, :, None, None])
    x = x.reshape(x.shape[0], -1)
    x = jax.nn.relu(x @ params["wl1"].T + params["bl1"])
    return x @ params["wl2"].T + params["bl2"]


if __name__ == "__main__":
    # Smallest valid shapes for the DQN conv stack: 36x36 -> 8x8 -> 3x3 -> 1x1.
    batch, c, h, w = 2, 4, 36, 36
    num_actions = 6

    key = jax.random.PRNGKey(0)
    pkey, okey = jax.random.split(key)
    params = init_dqn_params(pkey, c, h, w, num_actions)
    prepped = prepare_params(params, h, w)
    obs = jax.random.normal(okey, (batch, c, h, w), dtype=jnp.float32)

    q = jax.block_until_ready(dqn_forward(prepped, obs, num_actions))
    q_ref = jax.block_until_ready(dqn_reference(params, obs))

    assert q.shape == (batch, num_actions), q.shape
    # bf16 MXU operands (f32 accumulation) -> looser tolerance than pure f32.
    np.testing.assert_allclose(np.asarray(q), np.asarray(q_ref), rtol=3e-2, atol=3e-2)
    print("KERNEL_OK")
</pallas_src>

<mosaic_0001>
module attributes {stable_mosaic.version = 11 : i64} {
  func.func @_matmul_bias_kernel(%arg0: i32, %arg1: memref<128x256xbf16, #tpu.memory_space<vmem>>, %arg2: memref<256x32xbf16, #tpu.memory_space<vmem>>, %arg3: memref<1x32xf32, #tpu.memory_space<vmem>>, %arg4: memref<128x32xbf16, #tpu.memory_space<vmem>>) attributes {dimension_semantics = [#tpu.dimension_semantics<parallel>], iteration_bounds = array<i64: 1>, scalar_prefetch = 0 : i64, scratch_operands = 0 : i64, tpu.core_type = #tpu.core_type<tc>, window_params = [{transform_indices = @transform_0, window_bounds = array<i64: 128, 256>}, {pipeline_mode = #tpu.pipeline_mode<synchronous>, transform_indices = @transform_1, window_bounds = array<i64: 256, 32>}, {pipeline_mode = #tpu.pipeline_mode<synchronous>, transform_indices = @transform_2, window_bounds = array<i64: 1, 32>}, {transform_indices = @transform_3, window_bounds = array<i64: 128, 32>}]} {
    %c0 = arith.constant 0 : index
    %c0_0 = arith.constant 0 : index
    %0 = vector.load %arg1[%c0, %c0_0] : memref<128x256xbf16, #tpu.memory_space<vmem>>, vector<128x256xbf16>
    %c0_1 = arith.constant 0 : index
    %c0_2 = arith.constant 0 : index
    %1 = vector.load %arg2[%c0_1, %c0_2] : memref<256x32xbf16, #tpu.memory_space<vmem>>, vector<256x32xbf16>
    %cst = arith.constant dense<0.000000e+00> : vector<128x32xf32>
    %2 = tpu.matmul %0, %1, %cst {dimension_numbers = #tpu.dot_dimension_numbers<[1], [0], [0], [1], [0, 0, 1, 1], [], []>} : vector<128x256xbf16>, vector<256x32xbf16>, vector<128x32xf32> -> vector<128x32xf32>
    %c0_3 = arith.constant 0 : index
    %c0_4 = arith.constant 0 : index
    %3 = vector.load %arg3[%c0_3, %c0_4] : memref<1x32xf32, #tpu.memory_space<vmem>>, vector<1x32xf32>
    %4 = vector.broadcast %3 : vector<1x32xf32> to vector<128x32xf32>
    %5 = arith.addf %2, %4 : vector<128x32xf32>
    %cst_5 = arith.constant 0.000000e+00 : f32
    %6 = vector.broadcast %cst_5 : f32 to vector<128x32xf32>
    %7 = arith.maximumf %5, %6 : vector<128x32xf32>
    %8 = arith.truncf %7 : vector<128x32xf32> to vector<128x32xbf16>
    %c0_6 = arith.constant 0 : index
    %c0_7 = arith.constant 0 : index
    %9 = vector.load %arg4[%c0_6, %c0_7] : memref<128x32xbf16, #tpu.memory_space<vmem>>, vector<128x32xbf16>
    tpu.vector_store %arg4[%c0_6, %c0_7], %8 {strides = array<i32>} : memref<128x32xbf16, #tpu.memory_space<vmem>>, vector<128x32xbf16>,
    return
  }
  func.func @transform_0(%arg0: i32) -> (i32, i32) {
    %c0_i32 = arith.constant 0 : i32
    %c0_i32_0 = arith.constant 0 : i32
    return %arg0, %c0_i32 : i32, i32
  }
  func.func @transform_1(%arg0: i32) -> (i32, i32) {
    %c0_i32 = arith.constant 0 : i32
    %c0_i32_0 = arith.constant 0 : i32
    %c0_i32_1 = arith.constant 0 : i32
    return %c0_i32, %c0_i32_0 : i32, i32
  }
  func.func @transform_2(%arg0: i32) -> (i32, i32) {
    %c0_i32 = arith.constant 0 : i32
    %c0_i32_0 = arith.constant 0 : i32
    %c0_i32_1 = arith.constant 0 : i32
    return %c0_i32, %c0_i32_0 : i32, i32
  }
  func.func @transform_3(%arg0: i32) -> (i32, i32) {
    %c0_i32 = arith.constant 0 : i32
    %c0_i32_0 = arith.constant 0 : i32
    return %arg0, %c0_i32 : i32, i32
  }
}

module attributes {stable_mosaic.version = 11 : i64} {
  func.func @_matmul_bias_kernel(%arg0: i32, %arg1: memref<32x512xbf16, #tpu.memory_space<vmem>>, %arg2: memref<512x64xbf16, #tpu.memory_space<vmem>>, %arg3: memref<1x64xf32, #tpu.memory_space<vmem>>, %arg4: memref<32x64xbf16, #tpu.memory_space<vmem>>) attributes {dimension_semantics = [#tpu.dimension_semantics<parallel>], iteration_bounds = array<i64: 1>, scalar_prefetch = 0 : i64, scratch_operands = 0 : i64, tpu.core_type = #tpu.core_type<tc>, window_params = [{transform_indices = @transform_0, window_bounds = array<i64: 32, 512>}, {pipeline_mode = #tpu.pipeline_mode<synchronous>, transform_indices = @transform_1, window_bounds = array<i64: 512, 64>}, {pipeline_mode = #tpu.pipeline_mode<synchronous>, transform_indices = @transform_2, window_bounds = array<i64: 1, 64>}, {transform_indices = @transform_3, window_bounds = array<i64: 32, 64>}]} {
    %c0 = arith.constant 0 : index
    %c0_0 = arith.constant 0 : index
    %0 = vector.load %arg1[%c0, %c0_0] : memref<32x512xbf16, #tpu.memory_space<vmem>>, vector<32x512xbf16>
    %c0_1 = arith.constant 0 : index
    %c0_2 = arith.constant 0 : index
    %1 = vector.load %arg2[%c0_1, %c0_2] : memref<512x64xbf16, #tpu.memory_space<vmem>>, vector<512x64xbf16>
    %cst = arith.constant dense<0.000000e+00> : vector<32x64xf32>
    %2 = tpu.matmul %0, %1, %cst {dimension_numbers = #tpu.dot_dimension_numbers<[1], [0], [0], [1], [0, 0, 1, 1], [], []>} : vector<32x512xbf16>, vector<512x64xbf16>, vector<32x64xf32> -> vector<32x64xf32>
    %c0_3 = arith.constant 0 : index
    %c0_4 = arith.constant 0 : index
    %3 = vector.load %arg3[%c0_3, %c0_4] : memref<1x64xf32, #tpu.memory_space<vmem>>, vector<1x64xf32>
    %4 = vector.broadcast %3 : vector<1x64xf32> to vector<32x64xf32>
    %5 = arith.addf %2, %4 : vector<32x64xf32>
    %cst_5 = arith.constant 0.000000e+00 : f32
    %6 = vector.broadcast %cst_5 : f32 to vector<32x64xf32>
    %7 = arith.maximumf %5, %6 : vector<32x64xf32>
    %8 = arith.truncf %7 : vector<32x64xf32> to vector<32x64xbf16>
    %c0_6 = arith.constant 0 : index
    %c0_7 = arith.constant 0 : index
    %9 = vector.load %arg4[%c0_6, %c0_7] : memref<32x64xbf16, #tpu.memory_space<vmem>>, vector<32x64xbf16>
    tpu.vector_store %arg4[%c0_6, %c0_7], %8 {strides = array<i32>} : memref<32x64xbf16, #tpu.memory_space<vmem>>, vector<32x64xbf16>,
    return
  }
  func.func @transform_0(%arg0: i32) -> (i32, i32) {
    %c0_i32 = arith.constant 0 : i32
    %c0_i32_0 = arith.constant 0 : i32
    return %arg0, %c0_i32 : i32, i32
  }
  func.func @transform_1(%arg0: i32) -> (i32, i32) {
    %c0_i32 = arith.constant 0 : i32
    %c0_i32_0 = arith.constant 0 : i32
    %c0_i32_1 = arith.constant 0 : i32
    return %c0_i32, %c0_i32_0 : i32, i32
  }
  func.func @transform_2(%arg0: i32) -> (i32, i32) {
    %c0_i32 = arith.constant 0 : i32
    %c0_i32_0 = arith.constant 0 : i32
    %c0_i32_1 = arith.constant 0 : i32
    return %c0_i32, %c0_i32_0 : i32, i32
  }
  func.func @transform_3(%arg0: i32) -> (i32, i32) {
    %c0_i32 = arith.constant 0 : i32
    %c0_i32_0 = arith.constant 0 : i32
    return %arg0, %c0_i32 : i32, i32
  }
}

module attributes {stable_mosaic.version = 11 : i64} {
  func.func @_matmul_bias_kernel(%arg0: i32, %arg1: memref<16x576xbf16, #tpu.memory_space<vmem>>, %arg2: memref<576x64xbf16, #tpu.memory_space<vmem>>, %arg3: memref<1x64xf32, #tpu.memory_space<vmem>>, %arg4: memref<16x64xbf16, #tpu.memory_space<vmem>>) attributes {dimension_semantics = [#tpu.dimension_semantics<parallel>], iteration_bounds = array<i64: 1>, scalar_prefetch = 0 : i64, scratch_operands = 0 : i64, tpu.core_type = #tpu.core_type<tc>, window_params = [{transform_indices = @transform_0, window_bounds = array<i64: 16, 576>}, {pipeline_mode = #tpu.pipeline_mode<synchronous>, transform_indices = @transform_1, window_bounds = array<i64: 576, 64>}, {pipeline_mode = #tpu.pipeline_mode<synchronous>, transform_indices = @transform_2, window_bounds = array<i64: 1, 64>}, {transform_indices = @transform_3, window_bounds = array<i64: 16, 64>}]} {
    %c0 = arith.constant 0 : index
    %c0_0 = arith.constant 0 : index
    %0 = vector.load %arg1[%c0, %c0_0] : memref<16x576xbf16, #tpu.memory_space<vmem>>, vector<16x576xbf16>
    %c0_1 = arith.constant 0 : index
    %c0_2 = arith.constant 0 : index
    %1 = vector.load %arg2[%c0_1, %c0_2] : memref<576x64xbf16, #tpu.memory_space<vmem>>, vector<576x64xbf16>
    %cst = arith.constant dense<0.000000e+00> : vector<16x64xf32>
    %2 = tpu.matmul %0, %1, %cst {dimension_numbers = #tpu.dot_dimension_numbers<[1], [0], [0], [1], [0, 0, 1, 1], [], []>} : vector<16x576xbf16>, vector<576x64xbf16>, vector<16x64xf32> -> vector<16x64xf32>
    %c0_3 = arith.constant 0 : index
    %c0_4 = arith.constant 0 : index
    %3 = vector.load %arg3[%c0_3, %c0_4] : memref<1x64xf32, #tpu.memory_space<vmem>>, vector<1x64xf32>
    %4 = vector.broadcast %3 : vector<1x64xf32> to vector<16x64xf32>
    %5 = arith.addf %2, %4 : vector<16x64xf32>
    %cst_5 = arith.constant 0.000000e+00 : f32
    %6 = vector.broadcast %cst_5 : f32 to vector<16x64xf32>
    %7 = arith.maximumf %5, %6 : vector<16x64xf32>
    %8 = arith.truncf %7 : vector<16x64xf32> to vector<16x64xbf16>
    %c0_6 = arith.constant 0 : index
    %c0_7 = arith.constant 0 : index
    %9 = vector.load %arg4[%c0_6, %c0_7] : memref<16x64xbf16, #tpu.memory_space<vmem>>, vector<16x64xbf16>
    tpu.vector_store %arg4[%c0_6, %c0_7], %8 {strides = array<i32>} : memref<16x64xbf16, #tpu.memory_space<vmem>>, vector<16x64xbf16>,
    return
  }
  func.func @transform_0(%arg0: i32) -> (i32, i32) {
    %c0_i32 = arith.constant 0 : i32
    %c0_i32_0 = arith.constant 0 : i32
    return %arg0, %c0_i32 : i32, i32
  }
  func.func @transform_1(%arg0: i32) -> (i32, i32) {
    %c0_i32 = arith.constant 0 : i32
    %c0_i32_0 = arith.constant 0 : i32
    %c0_i32_1 = arith.constant 0 : i32
    return %c0_i32, %c0_i32_0 : i32, i32
  }
  func.func @transform_2(%arg0: i32) -> (i32, i32) {
    %c0_i32 = arith.constant 0 : i32
    %c0_i32_0 = arith.constant 0 : i32
    %c0_i32_1 = arith.constant 0 : i32
    return %c0_i32, %c0_i32_0 : i32, i32
  }
  func.func @transform_3(%arg0: i32) -> (i32, i32) {
    %c0_i32 = arith.constant 0 : i32
    %c0_i32_0 = arith.constant 0 : i32
    return %arg0, %c0_i32 : i32, i32
  }
}

module attributes {stable_mosaic.version = 11 : i64} {
  func.func @_mlp_head_kernel(%arg0: i32, %arg1: memref<16x64xbf16, #tpu.memory_space<vmem>>, %arg2: memref<64x512xbf16, #tpu.memory_space<vmem>>, %arg3: memref<1x512xf32, #tpu.memory_space<vmem>>, %arg4: memref<512x128xbf16, #tpu.memory_space<vmem>>, %arg5: memref<1x128xf32, #tpu.memory_space<vmem>>, %arg6: memref<16x128xf32, #tpu.memory_space<vmem>>) attributes {dimension_semantics = [#tpu.dimension_semantics<parallel>], iteration_bounds = array<i64: 1>, scalar_prefetch = 0 : i64, scratch_operands = 0 : i64, tpu.core_type = #tpu.core_type<tc>, window_params = [{transform_indices = @transform_0, window_bounds = array<i64: 16, 64>}, {pipeline_mode = #tpu.pipeline_mode<synchronous>, transform_indices = @transform_1, window_bounds = array<i64: 64, 512>}, {pipeline_mode = #tpu.pipeline_mode<synchronous>, transform_indices = @transform_2, window_bounds = array<i64: 1, 512>}, {pipeline_mode = #tpu.pipeline_mode<synchronous>, transform_indices = @transform_3, window_bounds = array<i64: 512, 128>}, {pipeline_mode = #tpu.pipeline_mode<synchronous>, transform_indices = @transform_4, window_bounds = array<i64: 1, 128>}, {transform_indices = @transform_5, window_bounds = array<i64: 16, 128>}]} {
    %c0 = arith.constant 0 : index
    %c0_0 = arith.constant 0 : index
    %0 = vector.load %arg1[%c0, %c0_0] : memref<16x64xbf16, #tpu.memory_space<vmem>>, vector<16x64xbf16>
    %c0_1 = arith.constant 0 : index
    %c0_2 = arith.constant 0 : index
    %1 = vector.load %arg2[%c0_1, %c0_2] : memref<64x512xbf16, #tpu.memory_space<vmem>>, vector<64x512xbf16>
    %cst = arith.constant dense<0.000000e+00> : vector<16x512xf32>
    %2 = tpu.matmul %0, %1, %cst {dimension_numbers = #tpu.dot_dimension_numbers<[1], [0], [0], [1], [0, 0, 1, 1], [], []>} : vector<16x64xbf16>, vector<64x512xbf16>, vector<16x512xf32> -> vector<16x512xf32>
    %c0_3 = arith.constant 0 : index
    %c0_4 = arith.constant 0 : index
    %3 = vector.load %arg3[%c0_3, %c0_4] : memref<1x512xf32, #tpu.memory_space<vmem>>, vector<1x512xf32>
    %4 = vector.broadcast %3 : vector<1x512xf32> to vector<16x512xf32>
    %5 = arith.addf %2, %4 : vector<16x512xf32>
    %cst_5 = arith.constant 0.000000e+00 : f32
    %6 = vector.broadcast %cst_5 : f32 to vector<16x512xf32>
    %7 = arith.maximumf %5, %6 : vector<16x512xf32>
    %8 = arith.truncf %7 : vector<16x512xf32> to vector<16x512xbf16>
    %c0_6 = arith.constant 0 : index
    %c0_7 = arith.constant 0 : index
    %9 = vector.load %arg4[%c0_6, %c0_7] : memref<512x128xbf16, #tpu.memory_space<vmem>>, vector<512x128xbf16>
    %cst_8 = arith.constant dense<0.000000e+00> : vector<16x128xf32>
    %10 = tpu.matmul %8, %9, %cst_8 {dimension_numbers = #tpu.dot_dimension_numbers<[1], [0], [0], [1], [0, 0, 1, 1], [], []>} : vector<16x512xbf16>, vector<512x128xbf16>, vector<16x128xf32> -> vector<16x128xf32>
    %c0_9 = arith.constant 0 : index
    %c0_10 = arith.constant 0 : index
    %11 = vector.load %arg5[%c0_9, %c0_10] : memref<1x128xf32, #tpu.memory_space<vmem>>, vector<1x128xf32>
    %12 = vector.broadcast %11 : vector<1x128xf32> to vector<16x128xf32>
    %13 = arith.addf %10, %12 : vector<16x128xf32>
    %c0_11 = arith.constant 0 : index
    %c0_12 = arith.constant 0 : index
    %14 = vector.load %arg6[%c0_11, %c0_12] : memref<16x128xf32, #tpu.memory_space<vmem>>, vector<16x128xf32>
    tpu.vector_store %arg6[%c0_11, %c0_12], %13 {strides = array<i32>} : memref<16x128xf32, #tpu.memory_space<vmem>>, vector<16x128xf32>,
    return
  }
  func.func @transform_0(%arg0: i32) -> (i32, i32) {
    %c0_i32 = arith.constant 0 : i32
    %c0_i32_0 = arith.constant 0 : i32
    return %arg0, %c0_i32 : i32, i32
  }
  func.func @transform_1(%arg0: i32) -> (i32, i32) {
    %c0_i32 = arith.constant 0 : i32
    %c0_i32_0 = arith.constant 0 : i32
    %c0_i32_1 = arith.constant 0 : i32
    return %c0_i32, %c0_i32_0 : i32, i32
  }
  func.func @transform_2(%arg0: i32) -> (i32, i32) {
    %c0_i32 = arith.constant 0 : i32
    %c0_i32_0 = arith.constant 0 : i32
    %c0_i32_1 = arith.constant 0 : i32
    return %c0_i32, %c0_i32_0 : i32, i32
  }
  func.func @transform_3(%arg0: i32) -> (i32, i32) {
    %c0_i32 = arith.constant 0 : i32
    %c0_i32_0 = arith.constant 0 : i32
    %c0_i32_1 = arith.constant 0 : i32
    return %c0_i32, %c0_i32_0 : i32, i32
  }
  func.func @transform_4(%arg0: i32) -> (i32, i32) {
    %c0_i32 = arith.constant 0 : i32
    %c0_i32_0 = arith.constant 0 : i32
    %c0_i32_1 = arith.constant 0 : i32
    return %c0_i32, %c0_i32_0 : i32, i32
  }
  func.func @transform_5(%arg0: i32) -> (i32, i32) {
    %c0_i32 = arith.constant 0 : i32
    %c0_i32_0 = arith.constant 0 : i32
    return %arg0, %c0_i32 : i32, i32
  }
}

</mosaic_0001>

<bundles_post_ra>
// kernel: dqn_forward.4
= control target key start
LH: loop header
LB: loop body
LE: loop exit
PB: predicated region body
PF: predicated region fallthrough
CT: control target
= control target key end

     0   :  { %vm423_vm0 = vcmask 257024   ;;  %s830_s1 = inlined_call_operand.vmem [shape: bf16[256,32], index: 1, kind: input, shape index: {}]   ;;  %s831_s0 = inlined_call_operand.vmem [shape: bf16[128,256], index: 0, kind: input, shape index: {}]   ;;  %s832_s2 = inlined_call_operand.vmem [shape: f32[1,32], index: 2, kind: input, shape index: {}]   ;;  %s833_s3 = inlined_call_operand.vmem [shape: bf16[128,32], index: 3, kind: output, shape index: {}]  }
   0x1   :  { %v589_v0 = vld [vmem:[%s830_s1 + $0x40] sm:$0xff]   ;;  %v591_v2 = vld [vmem:[%s830_s1 + $0x48] sm:$0xff]   ;;  %v593_v4 = vld [vmem:[%s830_s1 + $0x50] sm:$0xff]  }
   0x2   :  { %v590_v1 = vld [vmem:[%s830_s1] sm:$0xff]   ;;  %509 = vmatprep.subr.bf16.mxu0 %v589_v0  ;;  %573 = vmatprep.subr.bf16.mxu1 %v589_v0  ;;  %v592_v3 = vld [vmem:[%s830_s1 + $0x8] sm:$0xff]   ;;  %v594_v5 = vld [vmem:[%s830_s1 + $0x10] sm:$0xff]  }
   0x3   :  { %510 = vmatpush3.bf16.msra.mxu0 %v590_v1  ;;  %581 = vmatpush3.bf16.msra.mxu1 %v590_v1  ;;  %v595_v6 = vld [vmem:[%s830_s1 + $0x58] sm:$0xff]   ;;  %v597_v8 = vld [vmem:[%s830_s1 + $0x60] sm:$0xff]   ;;  %v599_v10 = vld [vmem:[%s830_s1 + $0x68] sm:$0xff]  }
   0x4   :  { %511 = vmatprep.subr.bf16.mxu0 %v591_v2  ;;  %574 = vmatprep.subr.bf16.mxu1 %v591_v2  ;;  %v596_v7 = vld [vmem:[%s830_s1 + $0x18] sm:$0xff]   ;;  %v598_v9 = vld [vmem:[%s830_s1 + $0x20] sm:$0xff]   ;;  %v600_v13 = vld [vmem:[%s830_s1 + $0x28] sm:$0xff]  }
   0x5   :  { %v607_v11 = vld [vmem:[%s831_s0 + $0x4] ss:$8 sps:$4 sm:$0xff]   ;;  %v601_v14 = vld [vmem:[%s830_s1 + $0x70] sm:$0xff]   ;;  %v603_v16 = vld [vmem:[%s830_s1 + $0x78] sm:$0xff]  }
   0x6   :  { %v610_v12 = vld [vmem:[%s831_s0 + $0x44] ss:$8 sps:$4 sm:$0xff]   ;;  %278 = vmatprep.mubr.bf16.mxu0 %v607_v11  ;;  %v602_v15 = vld [vmem:[%s830_s1 + $0x30] sm:$0xff]   ;;  %v604_v17 = vld [vmem:[%s830_s1 + $0x38] sm:$0xff]  }
   0x7   :  { %512 = vmatpush3.bf16.msra.mxu0 %v592_v3  ;;  %582 = vmatpush3.bf16.msra.mxu1 %v592_v3  ;;  %v605_v18 = vld [vmem:[%s831_s0] ss:$8 sps:$4 sm:$0xff]   ;;  %v611_v20 = vld [vmem:[%s831_s0 + $0x14] ss:$8 sps:$4 sm:$0xff]   ;;  %v615_v22 = vld [vmem:[%s831_s0 + $0x10] ss:$8 sps:$4 sm:$0xff]  }
   0x8   :  { %513 = vmatprep.subr.bf16.mxu0 %v593_v4  ;;  %575 = vmatprep.subr.bf16.mxu1 %v593_v4  ;;  %v608_v19 = vld [vmem:[%s831_s0 + $0x40] ss:$8 sps:$4 sm:$0xff]   ;;  %v613_v21 = vld [vmem:[%s831_s0 + $0x54] ss:$8 sps:$4 sm:$0xff]   ;;  %v616_v23 = vld [vmem:[%s831_s0 + $0x50] ss:$8 sps:$4 sm:$0xff]  }
   0x9   :  { %310 = vmatprep.mubr.bf16.mxu1 %v610_v12  ;;  %v617_v24 = vld [vmem:[%s831_s0 + $0x24] ss:$8 sps:$4 sm:$0xff]   ;;  %v621_v26 = vld [vmem:[%s831_s0 + $0x20] ss:$8 sps:$4 sm:$0xff]   ;;  %v623_v28 = vld [vmem:[%s831_s0 + $0x34] ss:$8 sps:$4 sm:$0xff]  }
   0xa   :  { %v619_v25 = vld [vmem:[%s831_s0 + $0x64] ss:$8 sps:$4 sm:$0xff]   ;;  %v622_v27 = vld [vmem:[%s831_s0 + $0x60] ss:$8 sps:$4 sm:$0xff]   ;;  %v625_v29 = vld [vmem:[%s831_s0 + $0x74] ss:$8 sps:$4 sm:$0xff]  }
   0xb   :  { %514 = vmatpush3.bf16.msra.mxu0 %v594_v5  ;;  %583 = vmatpush3.bf16.msra.mxu1 %v594_v5  ;;  %v627_v30 = vld [vmem:[%s831_s0 + $0x30] ss:$8 sps:$4 sm:$0xff]   ;;  %v748_v34 = vld [vmem:[%s832_s2] ss:$0 sm:$0xff] }
   0xc   :  { %515 = vmatprep.subr.bf16.mxu0 %v595_v6  ;;  %576 = vmatprep.subr.bf16.mxu1 %v595_v6  ;;  %v628_v31 = vld [vmem:[%s831_s0 + $0x70] ss:$8 sps:$4 sm:$0xff]  }
   0xf   :  { %516 = vmatpush3.bf16.msra.mxu0 %v596_v7  ;;  %584 = vmatpush3.bf16.msra.mxu1 %v596_v7 }
  0x10   :  { %517 = vmatprep.subr.bf16.mxu0 %v597_v8  ;;  %577 = vmatprep.subr.bf16.mxu1 %v597_v8 }
  0x13   :  { %518 = vmatpush3.bf16.msra.mxu0 %v598_v9  ;;  %585 = vmatpush3.bf16.msra.mxu1 %v598_v9 }
  0x14   :  { %519 = vmatprep.subr.bf16.mxu0 %v599_v10  ;;  %578 = vmatprep.subr.bf16.mxu1 %v599_v10 }
  0x17   :  { %520 = vmatpush3.bf16.msra.mxu0 %v600_v13  ;;  %586 = vmatpush3.bf16.msra.mxu1 %v600_v13 }
  0x18   :  { %521 = vmatprep.subr.bf16.mxu0 %v601_v14  ;;  %579 = vmatprep.subr.bf16.mxu1 %v601_v14 }
  0x1b   :  { %522 = vmatpush3.bf16.msra.mxu0 %v602_v15  ;;  %587 = vmatpush3.bf16.msra.mxu1 %v602_v15 }
  0x1c   :  { %523 = vmatprep.subr.bf16.mxu0 %v603_v16  ;;  %580 = vmatprep.subr.bf16.mxu1 %v603_v16 }
  0x1f   :  { %524 = vmatpush3.bf16.msra.mxu0 %v604_v17  ;;  %588 = vmatpush3.bf16.msra.mxu1 %v604_v17 }
  0x22   :  { %279 = vmatmul.mubr.bf16.vlgmr.msra.gmra.mrb[0].mxu0 %v605_v18  ;;  %311 = vmatmul.mubr.bf16.vlgmr.msra.gmra.mrb[0].mxu1 %v608_v19 }
  0x23   :  { %286 = vmatprep.mubr.bf16.mxu0 %v611_v20  ;;  %318 = vmatprep.mubr.bf16.mxu1 %v613_v21 }
  0x2a   :  { %287 = vmatmul.mubr.bf16.gmra.mrb[4].mxu0 %v615_v22  ;;  %319 = vmatmul.mubr.bf16.gmra.mrb[4].mxu1 %v616_v23 }
  0x2b   :  { %294 = vmatprep.mubr.bf16.mxu0 %v617_v24  ;;  %326 = vmatprep.mubr.bf16.mxu1 %v619_v25 }
  0x32   :  { %295 = vmatmul.mubr.bf16.gmra.mrb[8].mxu0 %v621_v26  ;;  %327 = vmatmul.mubr.bf16.gmra.mrb[8].mxu1 %v622_v27 }
  0x33   :  { %302 = vmatprep.mubr.bf16.mxu0 %v623_v28  ;;  %334 = vmatprep.mubr.bf16.mxu1 %v625_v29 }
  0x3a   :  { %303 = vmatmul.mubr.bf16.gmra.mrb[12].mxu0 %v627_v30  ;;  %335 = vmatmul.mubr.bf16.gmra.mrb[12].mxu1 %v628_v31 }
  0xf5   :  { %v525_v32 = vpop.f32.mrb[0].mxu0  ;;  %v549_v33 = vpop.f32.mrb[0].mxu1 }
  0xf6   :  { %v526_v35 = vpop.f32.mrb[1].mxu0  ;;  %v550_v36 = vpop.f32.mrb[1].mxu1 }
  0xf7   :  { %v527_v37 = vadd.f32 %v526_v35, %v525_v32  ;;  %v551_v38 = vadd.f32 %v550_v36, %v549_v33  ;;  %v528_v39 = vpop.f32.mrb[2].mxu0  ;;  %v552_v40 = vpop.f32.mrb[2].mxu1 }
  0xf8   :  { %v529_v41 = vpop.f32.mrb[3].mxu0  ;;  %v553_v42 = vpop.f32.mrb[3].mxu1 }
  0xf9   :  { %v281_v43 = vadd.f32 %v527_v37, %v748_v34  ;;  %v313_v44 = vadd.f32 %v551_v38, %v748_v34  ;;  %v530_v45 = vadd.f32 %v529_v41, %v528_v39  ;;  %v554_v46 = vadd.f32 %v553_v42, %v552_v40 }
  0xfb   :  { %v343_v47 = vmax.f32 %v281_v43, 0.0  ;;  %v351_v48 = vmax.f32 %v313_v44, 0.0  ;;  %v284_v49 = vadd.f32 %v530_v45, %v748_v34  ;;  %v316_v50 = vadd.f32 %v554_v46, %v748_v34 }
  0xfd   :  { %v493_v51 = vpack.c.bf16 %v343_v47, %v343_v47  ;;  %v501_v52 = vpack.c.bf16 %v351_v48, %v351_v48  ;;  %v344_v53 = vmax.f32 %v284_v49, 0.0  ;;  %v352_v54 = vmax.f32 %v316_v50, 0.0  ;;  %v531_v55 = vpop.f32.mrb[4].mxu0  ;;  %v555_v56 = vpop.f32.mrb[4].mxu1 }
  0xfe   :  { %v532_v57 = vpop.f32.mrb[5].mxu0  ;;  %v556_v58 = vpop.f32.mrb[5].mxu1 }
  0xff   :  { %424 = vst.msk [vmem:[%s833_s3] sm:$0xf] %vm423_vm0, %v493_v51  ;;  %432 = vst.msk [vmem:[%s833_s3 + $0x20] sm:$0xf] %vm423_vm0, %v501_v52  ;;  %v494_v59 = vpack.c.bf16 %v344_v53, %v344_v53  ;;  %v502_v60 = vpack.c.bf16 %v352_v54, %v352_v54  ;;  %v533_v61 = vadd.f32 %v532_v57, %v531_v55  ;;  %v534_v63 = vpop.f32.mrb[6].mxu0  ;;  %v558_v0 = vpop.f32.mrb[6].mxu1 }
 0x100   :  { %v557_v62 = vadd.f32 %v556_v58, %v555_v56  ;;  %v535_v1 = vpop.f32.mrb[7].mxu0  ;;  %v559_v2 = vpop.f32.mrb[7].mxu1 }
 0x101   :  { %425 = vst.msk [vmem:[%s833_s3 + $0x4] sm:$0xf] %vm423_vm0, %v494_v59  ;;  %433 = vst.msk [vmem:[%s833_s3 + $0x24] sm:$0xf] %vm423_vm0, %v502_v60  ;;  %v289_v3 = vadd.f32 %v533_v61, %v748_v34  ;;  %v536_v5 = vadd.f32 %v535_v1, %v534_v63  ;;  %v560_v6 = vadd.f32 %v559_v2, %v558_v0 }
 0x102   :  { %v321_v4 = vadd.f32 %v557_v62, %v748_v34 }
 0x103   :  { %v345_v7 = vmax.f32 %v289_v3, 0.0  ;;  %v292_v9 = vadd.f32 %v536_v5, %v748_v34  ;;  %v324_v10 = vadd.f32 %v560_v6, %v748_v34 }
 0x104   :  { %v353_v8 = vmax.f32 %v321_v4, 0.0 }
 0x105   :  { %v495_v11 = vpack.c.bf16 %v345_v7, %v345_v7  ;;  %v346_v13 = vmax.f32 %v292_v9, 0.0  ;;  %v354_v14 = vmax.f32 %v324_v10, 0.0  ;;  %v537_v15 = vpop.f32.mrb[8].mxu0  ;;  %v561_v16 = vpop.f32.mrb[8].mxu1 }
 0x106   :  { %v503_v12 = vpack.c.bf16 %v353_v8, %v353_v8  ;;  %v538_v17 = vpop.f32.mrb[9].mxu0  ;;  %v562_v18 = vpop.f32.mrb[9].mxu1 }
 0x107   :  { %426 = vst.msk [vmem:[%s833_s3 + $0x8] sm:$0xf] %vm423_vm0, %v495_v11  ;;  %v496_v19 = vpack.c.bf16 %v346_v13, %v346_v13  ;;  %v504_v20 = vpack.c.bf16 %v354_v14, %v354_v14  ;;  %v539_v21 = vadd.f32 %v538_v17, %v537_v15  ;;  %v563_v22 = vadd.f32 %v562_v18, %v561_v16  ;;  %v540_v23 = vpop.f32.mrb[10].mxu0  ;;  %v564_v24 = vpop.f32.mrb[10].mxu1 }
 0x108   :  { %434 = vst.msk [vmem:[%s833_s3 + $0x28] sm:$0xf] %vm423_vm0, %v503_v12  ;;  %v541_v25 = vpop.f32.mrb[11].mxu0  ;;  %v565_v26 = vpop.f32.mrb[11].mxu1 }
 0x109   :  { %427 = vst.msk [vmem:[%s833_s3 + $0xc] sm:$0xf] %vm423_vm0, %v496_v19  ;;  %435 = vst.msk [vmem:[%s833_s3 + $0x2c] sm:$0xf] %vm423_vm0, %v504_v20  ;;  %v297_v27 = vadd.f32 %v539_v21, %v748_v34  ;;  %v329_v28 = vadd.f32 %v563_v22, %v748_v34  ;;  %v542_v29 = vadd.f32 %v541_v25, %v540_v23 }
 0x10a   :  { %v566_v30 = vadd.f32 %v565_v26, %v564_v24 }
 0x10b   :  { %v347_v31 = vmax.f32 %v297_v27, 0.0  ;;  %v355_v32 = vmax.f32 %v329_v28, 0.0  ;;  %v300_v33 = vadd.f32 %v542_v29, %v748_v34 }
 0x10c   :  { %v332_v35 = vadd.f32 %v566_v30, %v748_v34 }
 0x10d   :  { %v497_v36 = vpack.c.bf16 %v347_v31, %v347_v31  ;;  %v505_v37 = vpack.c.bf16 %v355_v32, %v355_v32  ;;  %v348_v38 = vmax.f32 %v300_v33, 0.0  ;;  %v543_v40 = vpop.f32.mrb[12].mxu0  ;;  %v567_v41 = vpop.f32.mrb[12].mxu1 }
 0x10e   :  { %v356_v39 = vmax.f32 %v332_v35, 0.0  ;;  %v544_v42 = vpop.f32.mrb[13].mxu0  ;;  %v568_v43 = vpop.f32.mrb[13].mxu1 }
 0x10f   :  { %428 = vst.msk [vmem:[%s833_s3 + $0x10] sm:$0xf] %vm423_vm0, %v497_v36  ;;  %436 = vst.msk [vmem:[%s833_s3 + $0x30] sm:$0xf] %vm423_vm0, %v505_v37  ;;  %v498_v44 = vpack.c.bf16 %v348_v38, %v348_v38  ;;  %v545_v46 = vadd.f32 %v544_v42, %v543_v40  ;;  %v569_v47 = vadd.f32 %v568_v43, %v567_v41  ;;  %v546_v48 = vpop.f32.mrb[14].mxu0  ;;  %v570_v49 = vpop.f32.mrb[14].mxu1 }
 0x110   :  { %v506_v45 = vpack.c.bf16 %v356_v39, %v356_v39  ;;  %v547_v50 = vpop.f32.mrb[15].mxu0  ;;  %v571_v51 = vpop.f32.mrb[15].mxu1 }
 0x111   :  { %429 = vst.msk [vmem:[%s833_s3 + $0x14] sm:$0xf] %vm423_vm0, %v498_v44  ;;  %v305_v52 = vadd.f32 %v545_v46, %v748_v34  ;;  %v337_v53 = vadd.f32 %v569_v47, %v748_v34  ;;  %v548_v54 = vadd.f32 %v547_v50, %v546_v48  ;;  %v572_v55 = vadd.f32 %v571_v51, %v570_v49 }
 0x112   :  { %437 = vst.msk [vmem:[%s833_s3 + $0x34] sm:$0xf] %vm423_vm0, %v506_v45 }
 0x113   :  { %v349_v56 = vmax.f32 %v305_v52, 0.0  ;;  %v357_v57 = vmax.f32 %v337_v53, 0.0  ;;  %v308_v58 = vadd.f32 %v548_v54, %v748_v34  ;;  %v340_v59 = vadd.f32 %v572_v55, %v748_v34 }
 0x115   :  { %v499_v60 = vpack.c.bf16 %v349_v56, %v349_v56  ;;  %v507_v61 = vpack.c.bf16 %v357_v57, %v357_v57  ;;  %v350_v62 = vmax.f32 %v308_v58, 0.0  ;;  %v358_v63 = vmax.f32 %v340_v59, 0.0 }
 0x117   :  { %430 = vst.msk [vmem:[%s833_s3 + $0x18] sm:$0xf] %vm423_vm0, %v499_v60  ;;  %438 = vst.msk [vmem:[%s833_s3 + $0x38] sm:$0xf] %vm423_vm0, %v507_v61  ;;  %v500_v0 = vpack.c.bf16 %v350_v62, %v350_v62  ;;  %v508_v1 = vpack.c.bf16 %v358_v63, %v358_v63 }
 0x119   :  { %431 = vst.msk [vmem:[%s833_s3 + $0x1c] sm:$0xf] %vm423_vm0, %v500_v0  ;;  %439 = vst.msk [vmem:[%s833_s3 + $0x3c] sm:$0xf] %vm423_vm0, %v508_v1 }

// kernel: dqn_forward.5
= control target key start
LH: loop header
LB: loop body
LE: loop exit
PB: predicated region body
PF: predicated region fallthrough
CT: control target
= control target key end

     0   :  { %vm444_vm0 = vcmask 519168   ;;  %s761_s1 = inlined_call_operand.vmem [shape: bf16[512,64], index: 1, kind: input, shape index: {}]   ;;  %s762_s0 = inlined_call_operand.vmem [shape: bf16[32,512], index: 0, kind: input, shape index: {}]   ;;  %s763_s2 = inlined_call_operand.vmem [shape: f32[1,64], index: 2, kind: input, shape index: {}]   ;;  %s764_s3 = inlined_call_operand.vmem [shape: bf16[32,64], index: 3, kind: output, shape index: {}]  }
   0x1   :  { %v558_v0 = vld [vmem:[%s761_s1 + $0x40] sm:$0xff]   ;;  %v562_v4 = vld [vmem:[%s761_s1 + $0x48] sm:$0xff]   ;;  %v566_v8 = vld [vmem:[%s761_s1 + $0x50] sm:$0xff]  }
   0x2   :  { %v559_v1 = vld [vmem:[%s761_s1 + $0xc0] sm:$0xff]   ;;  %502 = vmatprep.subr.bf16.mxu0 %v558_v0  ;;  %v563_v5 = vld [vmem:[%s761_s1 + $0xc8] sm:$0xff]   ;;  %v567_v9 = vld [vmem:[%s761_s1 + $0xd0] sm:$0xff]  }
   0x3   :  { %v560_v2 = vld [vmem:[%s761_s1] sm:$0xff]   ;;  %530 = vmatprep.subr.bf16.mxu1 %v559_v1  ;;  %v564_v6 = vld [vmem:[%s761_s1 + $0x8] sm:$0xff]   ;;  %v568_v10 = vld [vmem:[%s761_s1 + $0x10] sm:$0xff]  }
   0x4   :  { %v561_v3 = vld [vmem:[%s761_s1 + $0x80] sm:$0xff]   ;;  %503 = vmatpush3.bf16.msra.mxu0 %v560_v2  ;;  %v565_v7 = vld [vmem:[%s761_s1 + $0x88] sm:$0xff]   ;;  %v569_v11 = vld [vmem:[%s761_s1 + $0x90] sm:$0xff]  }
   0x5   :  { %531 = vmatpush3.bf16.msra.mxu1 %v561_v3  ;;  %504 = vmatprep.subr.bf16.mxu0 %v562_v4  ;;  %v570_v12 = vld [vmem:[%s761_s1 + $0x58] sm:$0xff]   ;;  %v574_v16 = vld [vmem:[%s761_s1 + $0x60] sm:$0xff]   ;;  %v578_v20 = vld [vmem:[%s761_s1 + $0x68] sm:$0xff]  }
   0x6   :  { %532 = vmatprep.subr.bf16.mxu1 %v563_v5  ;;  %v571_v13 = vld [vmem:[%s761_s1 + $0xd8] sm:$0xff]   ;;  %v575_v17 = vld [vmem:[%s761_s1 + $0xe0] sm:$0xff]   ;;  %v579_v21 = vld [vmem:[%s761_s1 + $0xe8] sm:$0xff]  }
   0x7   :  { %v572_v14 = vld [vmem:[%s761_s1 + $0x18] sm:$0xff]   ;;  %v576_v18 = vld [vmem:[%s761_s1 + $0x20] sm:$0xff]   ;;  %v580_v22 = vld [vmem:[%s761_s1 + $0x28] sm:$0xff]  }
   0x8   :  { %505 = vmatpush3.bf16.msra.mxu0 %v564_v6  ;;  %v573_v15 = vld [vmem:[%s761_s1 + $0x98] sm:$0xff]   ;;  %v577_v19 = vld [vmem:[%s761_s1 + $0xa0] sm:$0xff]   ;;  %v581_v23 = vld [vmem:[%s761_s1 + $0xa8] sm:$0xff]  }
   0x9   :  { %533 = vmatpush3.bf16.msra.mxu1 %v565_v7  ;;  %506 = vmatprep.subr.bf16.mxu0 %v566_v8  ;;  %v582_v24 = vld [vmem:[%s761_s1 + $0x70] sm:$0xff]   ;;  %v586_v28 = vld [vmem:[%s761_s1 + $0x78] sm:$0xff]   ;;  %v453_v42 = vld [vmem:[%s763_s2] ss:$0 sm:$0xff] }
   0xa   :  { %534 = vmatprep.subr.bf16.mxu1 %v567_v9  ;;  %v583_v25 = vld [vmem:[%s761_s1 + $0xf0] sm:$0xff]   ;;  %v587_v29 = vld [vmem:[%s761_s1 + $0xf8] sm:$0xff]  }
   0xb   :  { %v584_v26 = vld [vmem:[%s761_s1 + $0x30] sm:$0xff]   ;;  %v588_v30 = vld [vmem:[%s761_s1 + $0x38] sm:$0xff]  }
   0xc   :  { %507 = vmatpush3.bf16.msra.mxu0 %v568_v10  ;;  %v585_v27 = vld [vmem:[%s761_s1 + $0xb0] sm:$0xff]   ;;  %v589_v31 = vld [vmem:[%s761_s1 + $0xb8] sm:$0xff]  }
   0xd   :  { %535 = vmatpush3.bf16.msra.mxu1 %v569_v11  ;;  %508 = vmatprep.subr.bf16.mxu0 %v570_v12  ;;  %v590_v32 = vld [vmem:[%s762_s0] ss:$16 sps:$4 sm:$0xff]   ;;  %v592_v33 = vld [vmem:[%s762_s0 + $0x4] ss:$16 sps:$4 sm:$0xff]   ;;  %v593_v34 = vld [vmem:[%s762_s0 + $0x8] ss:$16 sps:$4 sm:$0xff]  }
   0xe   :  { %536 = vmatprep.subr.bf16.mxu1 %v571_v13  ;;  %v595_v35 = vld [vmem:[%s762_s0 + $0xc] ss:$16 sps:$4 sm:$0xff]   ;;  %358 = vmatprep.mubr.bf16.mxu0 %v592_v33  ;;  %v596_v36 = vld [vmem:[%s762_s0 + $0x24] ss:$16 sps:$4 sm:$0xff]   ;;  %v600_v38 = vld [vmem:[%s762_s0 + $0x20] ss:$16 sps:$4 sm:$0xff]  }
   0xf   :  { %407 = vmatprep.mubr.bf16.mxu1 %v595_v35  ;;  %v598_v37 = vld [vmem:[%s762_s0 + $0x2c] ss:$16 sps:$4 sm:$0xff]   ;;  %v601_v39 = vld [vmem:[%s762_s0 + $0x28] ss:$16 sps:$4 sm:$0xff]  }
  0x10   :  { %509 = vmatpush3.bf16.msra.mxu0 %v572_v14 }
  0x11   :  { %537 = vmatpush3.bf16.msra.mxu1 %v573_v15  ;;  %510 = vmatprep.subr.bf16.mxu0 %v574_v16 }
  0x12   :  { %538 = vmatprep.subr.bf16.mxu1 %v575_v17 }
  0x14   :  { %511 = vmatpush3.bf16.msra.mxu0 %v576_v18 }
  0x15   :  { %539 = vmatpush3.bf16.msra.mxu1 %v577_v19  ;;  %512 = vmatprep.subr.bf16.mxu0 %v578_v20 }
  0x16   :  { %540 = vmatprep.subr.bf16.mxu1 %v579_v21 }
  0x18   :  { %513 = vmatpush3.bf16.msra.mxu0 %v580_v22 }
  0x19   :  { %541 = vmatpush3.bf16.msra.mxu1 %v581_v23  ;;  %514 = vmatprep.subr.bf16.mxu0 %v582_v24 }
  0x1a   :  { %542 = vmatprep.subr.bf16.mxu1 %v583_v25 }
  0x1c   :  { %515 = vmatpush3.bf16.msra.mxu0 %v584_v26 }
  0x1d   :  { %543 = vmatpush3.bf16.msra.mxu1 %v585_v27  ;;  %516 = vmatprep.subr.bf16.mxu0 %v586_v28 }
  0x1e   :  { %544 = vmatprep.subr.bf16.mxu1 %v587_v29 }
  0x20   :  { %517 = vmatpush3.bf16.msra.mxu0 %v588_v30 }
  0x21   :  { %545 = vmatpush3.bf16.msra.mxu1 %v589_v31 }
  0x23   :  { %359 = vmatmul.mubr.bf16.vlgmr.msra.gmra.mrb[0].mxu0 %v590_v32 }
  0x24   :  { %408 = vmatmul.mubr.bf16.vlgmr.msra.gmra.mrb[0].mxu1 %v593_v34  ;;  %366 = vmatprep.mubr.bf16.mxu0 %v596_v36 }
  0x25   :  { %415 = vmatprep.mubr.bf16.mxu1 %v598_v37 }
  0x2b   :  { %367 = vmatmul.mubr.bf16.gmra.mrb[4].mxu0 %v600_v38 }
  0x2c   :  { %416 = vmatmul.mubr.bf16.gmra.mrb[4].mxu1 %v601_v39 }
  0xf6   :  { %v518_v40 = vpop.f32.mrb[0].mxu0 }
  0xf7   :  { %v546_v41 = vpop.f32.mrb[0].mxu1  ;;  %v519_v43 = vpop.f32.mrb[1].mxu0 }
  0xf8   :  { %v520_v44 = vadd.f32 %v519_v43, %v518_v40  ;;  %v547_v45 = vpop.f32.mrb[1].mxu1  ;;  %v521_v46 = vpop.f32.mrb[2].mxu0 }
  0xf9   :  { %v548_v47 = vadd.f32 %v547_v45, %v546_v41  ;;  %v549_v48 = vpop.f32.mrb[2].mxu1  ;;  %v522_v49 = vpop.f32.mrb[3].mxu0 }
  0xfa   :  { %v361_v50 = vadd.f32 %v520_v44, %v453_v42  ;;  %v523_v51 = vadd.f32 %v522_v49, %v521_v46  ;;  %v550_v52 = vpop.f32.mrb[3].mxu1 }
  0xfb   :  { %v551_v53 = vadd.f32 %v550_v52, %v549_v48 }
  0xfc   :  { %v410_v54 = vadd.f32 %v548_v47, %v361_v50  ;;  %v364_v55 = vadd.f32 %v523_v51, %v453_v42 }
  0xfe   :  { %v424_v56 = vmax.f32 %v410_v54, 0.0  ;;  %v413_v57 = vadd.f32 %v551_v53, %v364_v55  ;;  %v524_v58 = vpop.f32.mrb[4].mxu0 }
  0xff   :  { %v552_v59 = vpop.f32.mrb[4].mxu1  ;;  %v525_v60 = vpop.f32.mrb[5].mxu0 }
 0x100   :  { %v498_v61 = vpack.c.bf16 %v424_v56, %v424_v56  ;;  %v425_v62 = vmax.f32 %v413_v57, 0.0  ;;  %v526_v63 = vadd.f32 %v525_v60, %v524_v58  ;;  %v553_v0 = vpop.f32.mrb[5].mxu1  ;;  %v527_v1 = vpop.f32.mrb[6].mxu0 }
 0x101   :  { %v554_v2 = vadd.f32 %v553_v0, %v552_v59  ;;  %v555_v3 = vpop.f32.mrb[6].mxu1  ;;  %v528_v4 = vpop.f32.mrb[7].mxu0 }
 0x102   :  { %445 = vst.msk [vmem:[%s764_s3] sm:$0xf] %vm444_vm0, %v498_v61  ;;  %v499_v5 = vpack.c.bf16 %v425_v62, %v425_v62  ;;  %v369_v6 = vadd.f32 %v526_v63, %v453_v42  ;;  %v529_v7 = vadd.f32 %v528_v4, %v527_v1  ;;  %v556_v8 = vpop.f32.mrb[7].mxu1 }
 0x103   :  { %v557_v9 = vadd.f32 %v556_v8, %v555_v3 }
 0x104   :  { %446 = vst.msk [vmem:[%s764_s3 + $0x4] sm:$0xf] %vm444_vm0, %v499_v5  ;;  %v418_v10 = vadd.f32 %v554_v2, %v369_v6  ;;  %v372_v11 = vadd.f32 %v529_v7, %v453_v42 }
 0x106   :  { %v426_v12 = vmax.f32 %v418_v10, 0.0  ;;  %v421_v13 = vadd.f32 %v557_v9, %v372_v11 }
 0x108   :  { %v500_v14 = vpack.c.bf16 %v426_v12, %v426_v12  ;;  %v427_v15 = vmax.f32 %v421_v13, 0.0 }
 0x10a   :  { %447 = vst.msk [vmem:[%s764_s3 + $0x8] sm:$0xf] %vm444_vm0, %v500_v14  ;;  %v501_v16 = vpack.c.bf16 %v427_v15, %v427_v15 }
 0x10c   :  { %448 = vst.msk [vmem:[%s764_s3 + $0xc] sm:$0xf] %vm444_vm0, %v501_v16 }

// kernel: dqn_forward.6
= control target key start
LH: loop header
LB: loop body
LE: loop exit
PB: predicated region body
PF: predicated region fallthrough
CT: control target
= control target key end

     0   :  { %v638_v33 = vmov 0.0   ;;  %vm639_vm0 = vmmov 0   ;;  %vm341_vm1 = vcmask 523264   ;;  %vm478_vm2 = vcmask 519168   ;;  %s792_s1 = inlined_call_operand.vmem [shape: bf16[576,64], index: 1, kind: input, shape index: {}]   ;;  %s793_s0 = inlined_call_operand.vmem [shape: bf16[16,576], index: 0, kind: input, shape index: {}]   ;;  %s794_s2 = inlined_call_operand.vmem [shape: f32[1,64], index: 2, kind: input, shape index: {}]   ;;  %s795_s3 = inlined_call_operand.vmem [shape: bf16[16,64], index: 3, kind: output, shape index: {}]  }
   0x1   :  { %v595_v0 = vld [vmem:[%s792_s1 + $0x40] sm:$0xff]   ;;  %v599_v4 = vld [vmem:[%s792_s1 + $0x48] sm:$0xff]   ;;  %v603_v8 = vld [vmem:[%s792_s1 + $0x50] sm:$0xff]  }
   0x2   :  { %v596_v1 = vld [vmem:[%s792_s1] sm:$0xff]   ;;  %532 = vmatprep.subr.bf16.mxu0 %v595_v0  ;;  %v600_v5 = vld [vmem:[%s792_s1 + $0x8] sm:$0xff]   ;;  %v604_v9 = vld [vmem:[%s792_s1 + $0x10] sm:$0xff]  }
   0x3   :  { %v597_v2 = vld [vmem:[%s792_s1 + $0xc0] sm:$0xff]   ;;  %533 = vmatpush3.bf16.msra.mxu0 %v596_v1  ;;  %v601_v6 = vld [vmem:[%s792_s1 + $0xc8] sm:$0xff]   ;;  %v605_v10 = vld [vmem:[%s792_s1 + $0xd0] sm:$0xff]  }
   0x4   :  { %v598_v3 = vld [vmem:[%s792_s1 + $0x80] sm:$0xff]   ;;  %554 = vmatprep.subr.bf16.mxu1 %v597_v2  ;;  %534 = vmatprep.subr.bf16.mxu0 %v599_v4  ;;  %v602_v7 = vld [vmem:[%s792_s1 + $0x88] sm:$0xff]   ;;  %v606_v11 = vld [vmem:[%s792_s1 + $0x90] sm:$0xff]  }
   0x5   :  { %555 = vmatpush3.bf16.msra.mxu1 %v598_v3  ;;  %v607_v12 = vld [vmem:[%s792_s1 + $0x58] sm:$0xff]   ;;  %v611_v16 = vld [vmem:[%s792_s1 + $0x60] sm:$0xff]   ;;  %v615_v20 = vld [vmem:[%s792_s1 + $0x68] sm:$0xff]  }
   0x6   :  { %556 = vmatprep.subr.bf16.mxu1 %v601_v6  ;;  %v608_v13 = vld [vmem:[%s792_s1 + $0x18] sm:$0xff]   ;;  %v612_v17 = vld [vmem:[%s792_s1 + $0x20] sm:$0xff]   ;;  %v616_v21 = vld [vmem:[%s792_s1 + $0x28] sm:$0xff]  }
   0x7   :  { %535 = vmatpush3.bf16.msra.mxu0 %v600_v5  ;;  %v609_v14 = vld [vmem:[%s792_s1 + $0xd8] sm:$0xff]   ;;  %v613_v18 = vld [vmem:[%s792_s1 + $0xe0] sm:$0xff]   ;;  %v617_v22 = vld [vmem:[%s792_s1 + $0xe8] sm:$0xff]  }
   0x8   :  { %536 = vmatprep.subr.bf16.mxu0 %v603_v8  ;;  %v610_v15 = vld [vmem:[%s792_s1 + $0x98] sm:$0xff]   ;;  %v614_v19 = vld [vmem:[%s792_s1 + $0xa0] sm:$0xff]   ;;  %v618_v23 = vld [vmem:[%s792_s1 + $0xa8] sm:$0xff]  }
   0x9   :  { %557 = vmatpush3.bf16.msra.mxu1 %v602_v7  ;;  %v619_v24 = vld [vmem:[%s792_s1 + $0x70] sm:$0xff]   ;;  %v623_v28 = vld [vmem:[%s792_s1 + $0x78] sm:$0xff]   ;;  %v632_v36 = vld [vmem:[%s793_s0 + $0xc] ss:$20 sps:$4 sm:$0xff]  }
   0xa   :  { %558 = vmatprep.subr.bf16.mxu1 %v605_v10  ;;  %v620_v25 = vld [vmem:[%s792_s1 + $0x30] sm:$0xff]   ;;  %v624_v29 = vld [vmem:[%s792_s1 + $0x38] sm:$0xff]   ;;  %v633_v37 = vld [vmem:[%s792_s1 + $0x100] sm:$0xff]   ;;  %418 = vmatprep.mubr.bf16.mxu1 %v632_v36 }
   0xb   :  { %537 = vmatpush3.bf16.msra.mxu0 %v604_v9  ;;  %v621_v26 = vld [vmem:[%s792_s1 + $0xf0] sm:$0xff]   ;;  %v625_v30 = vld [vmem:[%s792_s1 + $0xf8] sm:$0xff]   ;;  %v634_v38 = vld [vmem:[%s792_s1 + $0x108] sm:$0xff]  }
   0xc   :  { %538 = vmatprep.subr.bf16.mxu0 %v607_v12  ;;  %v622_v27 = vld [vmem:[%s792_s1 + $0xb0] sm:$0xff]   ;;  %v628_v32 = vld [vmem:[%s793_s0 + $0x4] ss:$20 sps:$4 sm:$0xff]   ;;  %v630_v35 = vld [vmem:[%s793_s0 + $0x8] ss:$20 sps:$4 sm:$0xff]  }
   0xd   :  { %559 = vmatpush3.bf16.msra.mxu1 %v606_v11  ;;  %v626_v31 = vld [vmem:[%s793_s0] ss:$20 sps:$4 sm:$0xff]   ;;  %v629_v34 = vld [vmem:[%s792_s1 + $0xb8] sm:$0xff]   ;;  %377 = vmatprep.mubr.bf16.mxu0 %v628_v32  ;;  %v637_v41 = vld [vmem:[%s793_s0 + $0x10] ss:$20 sps:$4 sm:$0xff]  }
   0xe   :  { %560 = vmatprep.subr.bf16.mxu1 %v609_v14  ;;  %v635_v39 = vld [vmem:[%s792_s1 + $0x110] sm:$0xff]   ;;  %v636_v40 = vld [vmem:[%s792_s1 + $0x118] sm:$0xff]   ;;  %v485_v43 = vld [vmem:[%s794_s2] ss:$0 sm:$0xff] }
   0xf   :  { %539 = vmatpush3.bf16.msra.mxu0 %v608_v13 }
  0x10   :  { %540 = vmatprep.subr.bf16.mxu0 %v611_v16 }
  0x11   :  { %561 = vmatpush3.bf16.msra.mxu1 %v610_v15 }
  0x12   :  { %562 = vmatprep.subr.bf16.mxu1 %v613_v18 }
  0x13   :  { %541 = vmatpush3.bf16.msra.mxu0 %v612_v17 }
  0x14   :  { %542 = vmatprep.subr.bf16.mxu0 %v615_v20 }
  0x15   :  { %563 = vmatpush3.bf16.msra.mxu1 %v614_v19 }
  0x16   :  { %564 = vmatprep.subr.bf16.mxu1 %v617_v22 }
  0x17   :  { %543 = vmatpush3.bf16.msra.mxu0 %v616_v21 }
  0x18   :  { %544 = vmatprep.subr.bf16.mxu0 %v619_v24 }
  0x19   :  { %565 = vmatpush3.bf16.msra.mxu1 %v618_v23 }
  0x1a   :  { %566 = vmatprep.subr.bf16.mxu1 %v621_v26 }
  0x1b   :  { %545 = vmatpush3.bf16.msra.mxu0 %v620_v25 }
  0x1c   :  { %546 = vmatprep.subr.bf16.mxu0 %v623_v28 }
  0x1d   :  { %567 = vmatpush3.bf16.msra.mxu1 %v622_v27 }
  0x1e   :  { %568 = vmatprep.subr.bf16.mxu1 %v625_v30 }
  0x1f   :  { %547 = vmatpush3.bf16.msra.mxu0 %v624_v29 }
  0x20   :  { %581 = vmatprep.subr.bf16.mxu0 %v638_v33 }
  0x21   :  { %569 = vmatpush3.bf16.msra.mxu1 %v629_v34 }
  0x22   :  { %378 = vmatmul.mubr.bf16.vlgmr.msra.gmra.mrb[0].mxu0 %v626_v31 }
  0x23   :  { %589 = vmatprep.mubr.msk.bf16.mxu0 %vm639_vm0, %v638_v33  ;;  %582 = vmatpush3.bf16.msra.mxu0 %v633_v37 }
  0x24   :  { %419 = vmatmul.mubr.bf16.vlgmr.msra.gmra.mrb[0].mxu1 %v630_v35  ;;  %583 = vmatprep.subr.bf16.mxu0 %v638_v33 }
  0x27   :  { %584 = vmatpush3.bf16.msra.mxu0 %v634_v38 }
  0x28   :  { %585 = vmatprep.subr.bf16.mxu0 %v638_v33 }
  0x2b   :  { %586 = vmatpush3.bf16.msra.mxu0 %v635_v39 }
  0x2c   :  { %587 = vmatprep.subr.bf16.mxu0 %v638_v33 }
  0x2f   :  { %588 = vmatpush3.bf16.msra.mxu0 %v636_v40 }
  0x32   :  { %590 = vmatmul.mubr.msk.bf16.vlgmr.msra.gmra.mrb[4].mxu0 %vm341_vm1, %v637_v41 }
  0xf5   :  { %v548_v42 = vpop.f32.mrb[0].mxu0 }
  0xf6   :  { %v549_v44 = vpop.f32.mrb[1].mxu0 }
  0xf7   :  { %v550_v45 = vadd.f32 %v549_v44, %v548_v42  ;;  %v551_v46 = vpop.f32.mrb[2].mxu0  ;;  %v570_v47 = vpop.f32.mrb[0].mxu1 }
  0xf8   :  { %v552_v48 = vpop.f32.mrb[3].mxu0  ;;  %v571_v51 = vpop.f32.mrb[1].mxu1 }
  0xf9   :  { %v380_v49 = vadd.f32 %v550_v45, %v485_v43  ;;  %v553_v50 = vadd.f32 %v552_v48, %v551_v46  ;;  %v572_v52 = vadd.f32 %v571_v51, %v570_v47  ;;  %v573_v53 = vpop.f32.mrb[2].mxu1 }
  0xfa   :  { %v574_v55 = vpop.f32.mrb[3].mxu1 }
  0xfb   :  { %v383_v54 = vadd.f32 %v553_v50, %v485_v43  ;;  %v575_v56 = vadd.f32 %v574_v55, %v573_v53  ;;  %v421_v57 = vadd.f32 %v572_v52, %v380_v49 }
  0xfd   :  { %v424_v58 = vadd.f32 %v575_v56, %v383_v54 }
 0x105   :  { %v461_v59 = vpop.f32.mrb[4].mxu0 }
 0x106   :  { %v462_v60 = vadd.f32 %v461_v59, %v421_v57  ;;  %v591_v61 = vpop.f32.mrb[5].mxu0 }
 0x107   :  { %v464_v62 = vpop.f32.mrb[6].mxu0 }
 0x108   :  { %v468_v63 = vmax.f32 %v462_v60, 0.0  ;;  %v465_v0 = vadd.f32 %v464_v62, %v424_v58  ;;  %v592_v1 = vpop.f32.mrb[7].mxu0 }
 0x10a   :  { %v530_v2 = vpack.c.bf16 %v468_v63, %v468_v63  ;;  %v469_v3 = vmax.f32 %v465_v0, 0.0 }
 0x10c   :  { %479 = vst.msk [vmem:[%s795_s3] sm:$0xf] %vm478_vm2, %v530_v2  ;;  %v531_v4 = vpack.c.bf16 %v469_v3, %v469_v3 }
 0x10e   :  { %480 = vst.msk [vmem:[%s795_s3 + $0x4] sm:$0xf] %vm478_vm2, %v531_v4 }

// kernel: dqn_forward.7
= control target key start
LH: loop header
LB: loop body
LE: loop exit
PB: predicated region body
PF: predicated region fallthrough
CT: control target
= control target key end

     0   :  { %v753_v1 = vmov 0   ;;  %vm146_vm0 = vcmask 523264   ;;  %v41_v50 = vlaneseq  ;;  %s943_s1 = inlined_call_operand.vmem [shape: bf16[64,512], index: 1, kind: input, shape index: {}]   ;;  %s944_s0 = inlined_call_operand.vmem [shape: bf16[16,64], index: 0, kind: input, shape index: {}]   ;;  %s945_s3 = inlined_call_operand.vmem [shape: bf16[512,128], index: 3, kind: input, shape index: {}]   ;;  %s946_s2 = inlined_call_operand.vmem [shape: f32[1,512], index: 2, kind: input, shape index: {}]   ;;  %s947_s4 = inlined_call_operand.vmem [shape: f32[1,128], index: 4, kind: input, shape index: {}]   ;;  %s948_s5 = inlined_call_operand.vmem [shape: f32[16,128], index: 5, kind: output, shape index: {}]  }
   0x1   :  { %v696_v0 = vld [vmem:[%s943_s1 + $0x4] ss:$16 sps:$4 sm:$0xff]   ;;  %182 = vmatprep.mubr.bf16.mxu0 %v753_v1  ;;  %225 = vmatprep.mubr.bf16.mxu1 %v753_v1  ;;  %v698_v2 = vld [vmem:[%s943_s1 + $0xc] ss:$16 sps:$4 sm:$0xff]   ;;  %v700_v3 = vld [vmem:[%s943_s1] ss:$16 sps:$4 sm:$0xff]  }
   0x2   :  { %150 = vmatprep.subr.bf16.mxu0 %v696_v0  ;;  %v701_v4 = vld [vmem:[%s943_s1 + $0x8] ss:$16 sps:$4 sm:$0xff]   ;;  %193 = vmatprep.subr.bf16.mxu1 %v698_v2  ;;  %v702_v5 = vld [vmem:[%s943_s1 + $0x24] ss:$16 sps:$4 sm:$0xff]   ;;  %v704_v6 = vld [vmem:[%s943_s1 + $0x2c] ss:$16 sps:$4 sm:$0xff]  }
   0x3   :  { %151 = vmatpush1.bf16.msra.mxu0 %v700_v3  ;;  %194 = vmatpush1.bf16.msra.mxu1 %v701_v4  ;;  %v706_v7 = vld [vmem:[%s943_s1 + $0x20] ss:$16 sps:$4 sm:$0xff]   ;;  %v707_v8 = vld [vmem:[%s943_s1 + $0x28] ss:$16 sps:$4 sm:$0xff]   ;;  %v708_v9 = vld [vmem:[%s943_s1 + $0x44] ss:$16 sps:$4 sm:$0xff]  }
   0x4   :  { %152 = vmatprep.subr.bf16.mxu0 %v702_v5  ;;  %195 = vmatprep.subr.bf16.mxu1 %v704_v6  ;;  %v710_v10 = vld [vmem:[%s943_s1 + $0x4c] ss:$16 sps:$4 sm:$0xff]   ;;  %v712_v11 = vld [vmem:[%s943_s1 + $0x40] ss:$16 sps:$4 sm:$0xff]   ;;  %v713_v12 = vld [vmem:[%s943_s1 + $0x48] ss:$16 sps:$4 sm:$0xff]  }
   0x5   :  { %v714_v13 = vld [vmem:[%s943_s1 + $0x64] ss:$16 sps:$4 sm:$0xff]   ;;  %v716_v14 = vld [vmem:[%s943_s1 + $0x6c] ss:$16 sps:$4 sm:$0xff]   ;;  %v718_v15 = vld [vmem:[%s943_s1 + $0x60] ss:$16 sps:$4 sm:$0xff]  }
   0x6   :  { %v719_v16 = vld [vmem:[%s943_s1 + $0x68] ss:$16 sps:$4 sm:$0xff]   ;;  %v721_v17 = vld [vmem:[%s945_s3 + $0x40] sm:$0xff]   ;;  %v729_v26 = vld [vmem:[%s945_s3 + $0x50] sm:$0xff]   ;;  %v42_v51 = vshrl.u32 %v41_v50, 7 }
   0x7   :  { %153 = vmatpush1.bf16.msra.mxu0 %v706_v7  ;;  %196 = vmatpush1.bf16.msra.mxu1 %v707_v8  ;;  %v720_v18 = vld [vmem:[%s944_s0] sm:$0xff]   ;;  %v725_v22 = vld [vmem:[%s945_s3 + $0x48] sm:$0xff]   ;;  %v730_v27 = vld [vmem:[%s945_s3 + $0xd0] sm:$0xff]  }
   0x8   :  { %154 = vmatprep.subr.bf16.mxu0 %v708_v9  ;;  %197 = vmatprep.subr.bf16.mxu1 %v710_v10  ;;  %v722_v19 = vld [vmem:[%s945_s3 + $0xc0] sm:$0xff]   ;;  %v726_v23 = vld [vmem:[%s945_s3 + $0xc8] sm:$0xff]   ;;  %v731_v28 = vld [vmem:[%s945_s3 + $0x10] sm:$0xff]   ;;  %v43_v52 = vsub.s32 0, %v42_v51  ;;  %v51_v53 = vsub.s32 2, %v42_v51  ;;  %v47_v55 = vsub.s32 1, %v42_v51 }
   0x9   :  { %v723_v20 = vld [vmem:[%s945_s3] sm:$0xff]   ;;  %v727_v24 = vld [vmem:[%s945_s3 + $0x8] sm:$0xff]   ;;  %v732_v29 = vld [vmem:[%s945_s3 + $0x90] sm:$0xff]   ;;  %v55_v56 = vsub.s32 3, %v42_v51 }
   0xa   :  { %v724_v21 = vld [vmem:[%s945_s3 + $0x80] sm:$0xff]   ;;  %v728_v25 = vld [vmem:[%s945_s3 + $0x88] sm:$0xff]   ;;  %v733_v30 = vld [vmem:[%s945_s3 + $0x58] sm:$0xff]  }
   0xb   :  { %155 = vmatpush1.bf16.msra.mxu0 %v712_v11  ;;  %198 = vmatpush1.bf16.msra.mxu1 %v713_v12  ;;  %v734_v31 = vld [vmem:[%s945_s3 + $0xd8] sm:$0xff]   ;;  %v737_v34 = vld [vmem:[%s945_s3 + $0x60] sm:$0xff]   ;;  %v741_v38 = vld [vmem:[%s945_s3 + $0x68] sm:$0xff]  }
   0xc   :  { %156 = vmatprep.subr.bf16.mxu0 %v714_v13  ;;  %199 = vmatprep.subr.bf16.mxu1 %v716_v14  ;;  %v735_v32 = vld [vmem:[%s945_s3 + $0x18] sm:$0xff]   ;;  %v738_v35 = vld [vmem:[%s945_s3 + $0xe0] sm:$0xff]   ;;  %v742_v39 = vld [vmem:[%s945_s3 + $0xe8] sm:$0xff]  }
   0xd   :  { %v736_v33 = vld [vmem:[%s945_s3 + $0x98] sm:$0xff]   ;;  %v739_v36 = vld [vmem:[%s945_s3 + $0x20] sm:$0xff]   ;;  %v743_v40 = vld [vmem:[%s945_s3 + $0x28] sm:$0xff]  }
   0xe   :  { %v740_v37 = vld [vmem:[%s945_s3 + $0xa0] sm:$0xff]   ;;  %v744_v41 = vld [vmem:[%s945_s3 + $0xa8] sm:$0xff]   ;;  %v745_v42 = vld [vmem:[%s945_s3 + $0x70] sm:$0xff]  }
   0xf   :  { %157 = vmatpush1.bf16.msra.mxu0 %v718_v15  ;;  %200 = vmatpush1.bf16.msra.mxu1 %v719_v16  ;;  %v746_v43 = vld [vmem:[%s945_s3 + $0xf0] sm:$0xff]   ;;  %v749_v46 = vld [vmem:[%s945_s3 + $0x78] sm:$0xff]   ;;  %v39_v54 = vld [vmem:[%s946_s2] sm:$0xf] }
  0x10   :  { %651 = vmatprep.subr.bf16.mxu0 %v721_v17  ;;  %673 = vmatprep.subr.bf16.mxu1 %v722_v19  ;;  %v747_v44 = vld [vmem:[%s945_s3 + $0x30] sm:$0xff]   ;;  %v750_v47 = vld [vmem:[%s945_s3 + $0xf8] sm:$0xff]   ;;  %v44_v57 = vrot.slane %v39_v54, %v43_v52  ;;  %v52_v58 = vrot.slane %v39_v54, %v51_v53  ;;  %v48_v59 = vrot.slane %v39_v54, %v47_v55 }
  0x11   :  { %v748_v45 = vld [vmem:[%s945_s3 + $0xb0] sm:$0xff]   ;;  %v751_v48 = vld [vmem:[%s945_s3 + $0x38] sm:$0xff]   ;;  %v56_v60 = vrot.slane %v39_v54, %v55_v56 }
  0x12   :  { %616 = vmatmul.mubr.msk.bf16.vlgmr.msra.gmra.mrb[0].mxu0 %vm146_vm0, %v720_v18  ;;  %617 = vmatmul.mubr.msk.bf16.vlgmr.msra.gmra.mrb[0].mxu1 %vm146_vm0, %v720_v18  ;;  %v752_v49 = vld [vmem:[%s945_s3 + $0xb8] sm:$0xff]  }
  0x13   :  { %652 = vmatpush3.bf16.msra.mxu0 %v723_v20  ;;  %674 = vmatpush3.bf16.msra.mxu1 %v724_v21 }
  0x14   :  { %653 = vmatprep.subr.bf16.mxu0 %v725_v22  ;;  %675 = vmatprep.subr.bf16.mxu1 %v726_v23 }
  0x17   :  { %654 = vmatpush3.bf16.msra.mxu0 %v727_v24  ;;  %676 = vmatpush3.bf16.msra.mxu1 %v728_v25 }
  0x18   :  { %655 = vmatprep.subr.bf16.mxu0 %v729_v26  ;;  %677 = vmatprep.subr.bf16.mxu1 %v730_v27  ;;  %v618_v27 = vld [vmem:[%s947_s4] ss:$0 sm:$0xff] }
  0x1b   :  { %656 = vmatpush3.bf16.msra.mxu0 %v731_v28  ;;  %678 = vmatpush3.bf16.msra.mxu1 %v732_v29 }
  0x1c   :  { %657 = vmatprep.subr.bf16.mxu0 %v733_v30  ;;  %679 = vmatprep.subr.bf16.mxu1 %v734_v31 }
  0x1f   :  { %658 = vmatpush3.bf16.msra.mxu0 %v735_v32  ;;  %680 = vmatpush3.bf16.msra.mxu1 %v736_v33 }
  0x20   :  { %659 = vmatprep.subr.bf16.mxu0 %v737_v34  ;;  %681 = vmatprep.subr.bf16.mxu1 %v738_v35 }
  0x23   :  { %660 = vmatpush3.bf16.msra.mxu0 %v739_v36  ;;  %682 = vmatpush3.bf16.msra.mxu1 %v740_v37 }
  0x24   :  { %661 = vmatprep.subr.bf16.mxu0 %v741_v38  ;;  %683 = vmatprep.subr.bf16.mxu1 %v742_v39 }
  0x27   :  { %662 = vmatpush3.bf16.msra.mxu0 %v743_v40  ;;  %684 = vmatpush3.bf16.msra.mxu1 %v744_v41 }
  0x28   :  { %663 = vmatprep.subr.bf16.mxu0 %v745_v42  ;;  %685 = vmatprep.subr.bf16.mxu1 %v746_v43 }
  0x2b   :  { %664 = vmatpush3.bf16.msra.mxu0 %v747_v44  ;;  %686 = vmatpush3.bf16.msra.mxu1 %v748_v45 }
  0x2c   :  { %665 = vmatprep.subr.bf16.mxu0 %v749_v46  ;;  %687 = vmatprep.subr.bf16.mxu1 %v750_v47 }
  0x2f   :  { %666 = vmatpush3.bf16.msra.mxu0 %v751_v48  ;;  %688 = vmatpush3.bf16.msra.mxu1 %v752_v49 }
  0xe5   :  { %v184_v61 = vpop.f32.mrb[0].mxu0  ;;  %v227_v62 = vpop.f32.mrb[0].mxu1 }
  0xe6   :  { %v185_v63 = vadd.f32 %v184_v61, %v44_v57  ;;  %v228_v0 = vadd.f32 %v227_v62, %v52_v58  ;;  %v186_v1 = vpop.f32.mrb[1].mxu0  ;;  %v229_v2 = vpop.f32.mrb[1].mxu1 }
  0xe7   :  { %v187_v3 = vadd.f32 %v186_v1, %v48_v59  ;;  %v230_v4 = vadd.f32 %v229_v2, %v56_v60  ;;  %v188_v5 = vpop.f32.mrb[2].mxu0  ;;  %v231_v6 = vpop.f32.mrb[2].mxu1 }
  0xe8   :  { %v238_v7 = vmax.f32 %v228_v0, 0.0  ;;  %v189_v8 = vadd.f32 %v188_v5, %v44_v57  ;;  %v232_v9 = vadd.f32 %v231_v6, %v52_v58  ;;  %v190_v10 = vpop.f32.mrb[3].mxu0  ;;  %v233_v11 = vpop.f32.mrb[3].mxu1  ;;  %v236_v15 = vmax.f32 %v185_v63, 0.0 }
  0xe9   :  { %v239_v12 = vmax.f32 %v230_v4, 0.0  ;;  %v191_v13 = vadd.f32 %v190_v10, %v48_v59  ;;  %v234_v14 = vadd.f32 %v233_v11, %v56_v60  ;;  %v237_v18 = vmax.f32 %v187_v3, 0.0 }
  0xea   :  { %v240_v16 = vmax.f32 %v189_v8, 0.0  ;;  %v242_v17 = vmax.f32 %v232_v9, 0.0 }
  0xeb   :  { %v241_v19 = vmax.f32 %v191_v13, 0.0  ;;  %v243_v20 = vmax.f32 %v234_v14, 0.0 }
  0xec   :  { %v244_v21 = vpack.c.bf16 %v240_v16, %v236_v15  ;;  %v246_v22 = vpack.c.bf16 %v242_v17, %v238_v7 }
  0xed   :  { %v245_v23 = vpack.c.bf16 %v241_v19, %v237_v18  ;;  %v247_v24 = vpack.c.bf16 %v243_v20, %v239_v12 }
  0xef   :  { %543 = vmatprep.mubr.bf16.mxu0 %v245_v23  ;;  %584 = vmatprep.mubr.bf16.mxu1 %v247_v24 }
  0xf0   :  { %544 = vmatmul.mubr.bf16.vlgmr.msra.gmra.mrb[4].mxu0 %v244_v21  ;;  %585 = vmatmul.mubr.bf16.vlgmr.msra.gmra.mrb[4].mxu1 %v246_v22 }
 0x1c3   :  { %v667_v25 = vpop.f32.mrb[4].mxu0  ;;  %v689_v26 = vpop.f32.mrb[4].mxu1 }
 0x1c4   :  { %v668_v28 = vpop.f32.mrb[5].mxu0  ;;  %v690_v29 = vpop.f32.mrb[5].mxu1 }
 0x1c5   :  { %v669_v30 = vadd.f32 %v668_v28, %v667_v25  ;;  %v691_v31 = vadd.f32 %v690_v29, %v689_v26  ;;  %v670_v32 = vpop.f32.mrb[6].mxu0  ;;  %v692_v33 = vpop.f32.mrb[6].mxu1 }
 0x1c6   :  { %v671_v34 = vpop.f32.mrb[7].mxu0  ;;  %v693_v35 = vpop.f32.mrb[7].mxu1 }
 0x1c7   :  { %v546_v36 = vadd.f32 %v669_v30, %v618_v27  ;;  %v672_v37 = vadd.f32 %v671_v34, %v670_v32  ;;  %v694_v38 = vadd.f32 %v693_v35, %v692_v33 }
 0x1c9   :  { %v587_v39 = vadd.f32 %v691_v31, %v546_v36  ;;  %v549_v40 = vadd.f32 %v672_v37, %v618_v27 }
 0x1cb   :  { %593 = vst [vmem:[%s948_s5] sm:$0xff] %v587_v39  ;;  %v590_v41 = vadd.f32 %v694_v38, %v549_v40 }
 0x1cd   :  { %594 = vst [vmem:[%s948_s5 + $0x8] sm:$0xff] %v590_v41 }

</bundles_post_ra>
